<compile_context>
chip_gen: v5e
topology: v5e:2x2
jax: 0.10.0
libtpu: 0.0.40
codegen_flags: <defaults>
</compile_context>

<pallas_src>
import math

import jax
import jax.numpy as jnp
from jax import lax
from jax.experimental import pallas as pl
from jax.experimental.pallas import tpu as pltpu


def _round_up(x, m):
    return ((x + m - 1) // m) * m


def _make_flash_kernel(scale, tq, tk, lk_actual, lk_padded):
    needs_kv_mask = lk_padded > lk_actual

    def kernel(q_ref, k_ref, v_ref, o_ref, m_sc, l_sc, acc_sc):
        kv = pl.program_id(2)

        @pl.when(kv == 0)
        def _():
            m_sc[...] = jnp.full_like(m_sc, -jnp.inf)
            l_sc[...] = jnp.zeros_like(l_sc)
            acc_sc[...] = jnp.zeros_like(acc_sc)

        # Fold 1/sqrt(D) into q: tq*D VPU ops instead of tq*tk on the scores.
        q = q_ref[0] * scale          # [tq, D_pad]
        k = k_ref[0]                  # [tk, D_pad]
        v = v_ref[0]                  # [tk, Dv_pad]

        # scores = q @ k^T without materializing a transpose of k:
        # contract the last (feature) dim of both operands on the MXU.
        s = lax.dot_general(
            q, k, (((1,), (1,)), ((), ())),
            preferred_element_type=jnp.float32)            # [tq, tk]

        if needs_kv_mask:
            kv_ids = kv * tk + lax.broadcasted_iota(jnp.int32, (tq, tk), 1)
            s = jnp.where(kv_ids < lk_actual, s, -jnp.inf)

        # Online (flash) softmax update.
        m_prev = m_sc[...]
        m_new = jnp.maximum(m_prev, jnp.max(s, axis=-1, keepdims=True))
        alpha = jnp.exp(m_prev - m_new)
        p = jnp.exp(s - m_new)
        l_sc[...] = alpha * l_sc[...] + jnp.sum(p, axis=-1, keepdims=True)
        acc_sc[...] = alpha * acc_sc[...] + jnp.dot(
            p.astype(v.dtype), v, preferred_element_type=jnp.float32)
        m_sc[...] = m_new

        @pl.when(kv == pl.num_programs(2) - 1)
        def _():
            inv_l = pl.reciprocal(l_sc[...], approx=True)   # EUP, near-free
            o_ref[0] = (acc_sc[...] * inv_l).astype(o_ref.dtype)

    return kernel


def attention_forward(queries, keys, values, *, tq=128, tk=256):
    """Pallas-backed equivalent of Attention.forward (mask=None, dropout=None)."""
    B, Lq, D = queries.shape
    Bk, Lk, Dk = keys.shape
    Bv, Lv, Dv = values.shape
    assert B == Bk == Bv and D == Dk and Lk == Lv

    scale = 1.0 / math.sqrt(D)

    # Lane-align feature dims to 128 (lane-dense MXU work + unmasked stores).
    D_pad = _round_up(D, 128)
    Dv_pad = _round_up(Dv, 128)

    # Shrink tiles for small problems; keep sublane (8) alignment.
    tq = min(tq, _round_up(Lq, 8))
    tk = min(tk, _round_up(Lk, 8))
    Lq_pad = _round_up(Lq, tq)
    Lk_pad = _round_up(Lk, tk)

    def pad3(x, s1, s2):
        p1, p2 = s1 - x.shape[1], s2 - x.shape[2]
        if p1 or p2:
            x = jnp.pad(x, ((0, 0), (0, p1), (0, p2)))
        return x

    q_p = pad3(queries, Lq_pad, D_pad)
    k_p = pad3(keys, Lk_pad, D_pad)
    v_p = pad3(values, Lk_pad, Dv_pad)

    kernel = _make_flash_kernel(scale, tq, tk, Lk, Lk_pad)

    grid = (B, Lq_pad // tq, Lk_pad // tk)

    out = pl.pallas_call(
        kernel,
        out_shape=jax.ShapeDtypeStruct((B, Lq_pad, Dv_pad), queries.dtype),
        grid_spec=pltpu.PrefetchScalarGridSpec(
            num_scalar_prefetch=0,
            grid=grid,
            in_specs=[
                pl.BlockSpec((1, tq, D_pad), lambda b, qi, ki: (b, qi, 0)),
                pl.BlockSpec((1, tk, D_pad), lambda b, qi, ki: (b, ki, 0)),
                pl.BlockSpec((1, tk, Dv_pad), lambda b, qi, ki: (b, ki, 0)),
            ],
            out_specs=pl.BlockSpec((1, tq, Dv_pad), lambda b, qi, ki: (b, qi, 0)),
            scratch_shapes=[
                pltpu.VMEM((tq, 1), jnp.float32),        # m: running max
                pltpu.VMEM((tq, 1), jnp.float32),        # l: running denom
                pltpu.VMEM((tq, Dv_pad), jnp.float32),   # acc: unnormalized out
            ],
        ),
        compiler_params=pltpu.CompilerParams(
            # Batch and q-tile axes are independent (megacore sharding on v7x);
            # the kv axis carries the online-softmax accumulator -> arbitrary.
            dimension_semantics=("parallel", "parallel", "arbitrary"),
            # NOTE: default scoped-VMEM limits comfortably fit these tiles
            # (double-buffered f32 tiles at tq=128, tk=256 are < 2 MiB); raise
            # vmem_limit_bytes here only if tiles are grown substantially.
        ),
    )(q_p, k_p, v_p)

    if Lq_pad != Lq or Dv_pad != Dv:
        out = out[:, :Lq, :Dv]
    return out


def attention_reference(queries, keys, values):
    """Pure-JAX reference mirroring the PyTorch forward exactly."""
    D = queries.shape[-1]
    scores = jnp.einsum("bqd,bkd->bqk", queries, keys) / math.sqrt(D)
    attn = jax.nn.softmax(scores, axis=2)
    # (attn.unsqueeze(3) * values.unsqueeze(1)).sum(2)
    return jnp.sum(attn[..., None] * values[:, None, :, :], axis=2)


if __name__ == "__main__":
    key = jax.random.PRNGKey(0)
    kq, kk, kv = jax.random.split(key, 3)

    B, Lq, Lk, D, Dv = 2, 8, 8, 32, 32
    queries = jax.random.normal(kq, (B, Lq, D), dtype=jnp.float32)
    keys = jax.random.normal(kk, (B, Lk, D), dtype=jnp.float32)
    values = jax.random.normal(kv, (B, Lk, Dv), dtype=jnp.float32)

    out = attention_forward(queries, keys, values)
    out = jax.block_until_ready(out)

    ref = attention_reference(queries, keys, values)
    assert out.shape == (B, Lq, Dv)
    # approx reciprocal in the epilogue -> slightly looser tolerance.
    assert jnp.allclose(out, ref, atol=1e-2, rtol=1e-2), "mismatch vs reference"

    print("KERNEL_OK")
</pallas_src>

<mosaic_0001>
module attributes {stable_mosaic.version = 11 : i64} {
  func.func @kernel(%arg0: i32, %arg1: i32, %arg2: i32, %arg3: memref<1x8x128xf32, #tpu.memory_space<vmem>>, %arg4: memref<1x8x128xf32, #tpu.memory_space<vmem>>, %arg5: memref<1x8x128xf32, #tpu.memory_space<vmem>>, %arg6: memref<1x8x128xf32, #tpu.memory_space<vmem>>, %arg7: memref<8x1xf32, #tpu.memory_space<vmem>>, %arg8: memref<8x1xf32, #tpu.memory_space<vmem>>, %arg9: memref<8x128xf32, #tpu.memory_space<vmem>>) attributes {dimension_semantics = [#tpu.dimension_semantics<parallel>, #tpu.dimension_semantics<parallel>, #tpu.dimension_semantics<arbitrary>], iteration_bounds = array<i64: 2, 1, 1>, scalar_prefetch = 0 : i64, scratch_operands = 3 : i64, tpu.core_type = #tpu.core_type<tc>, window_params = [{transform_indices = @transform_0, window_bounds = array<i64: 1, 8, 128>}, {transform_indices = @transform_1, window_bounds = array<i64: 1, 8, 128>}, {transform_indices = @transform_2, window_bounds = array<i64: 1, 8, 128>}, {transform_indices = @transform_3, window_bounds = array<i64: 1, 8, 128>}]} {
    %c0_i32 = arith.constant 0 : i32
    %0 = arith.cmpi eq, %arg2, %c0_i32 : i32
    %1 = arith.extui %0 : i1 to i32
    %c0_i32_0 = arith.constant 0 : i32
    %2 = arith.cmpi ne, %1, %c0_i32_0 : i32
    scf.if %2 {
      %cst_27 = arith.constant 0xFF800000 : f32
      %37 = vector.broadcast %cst_27 : f32 to vector<8x1xf32>
      %c0_28 = arith.constant 0 : index
      %c0_29 = arith.constant 0 : index
      %38 = vector.load %arg7[%c0_28, %c0_29] : memref<8x1xf32, #tpu.memory_space<vmem>>, vector<8x1xf32>
      tpu.vector_store %arg7[%c0_28, %c0_29], %37 {strides = array<i32>} : memref<8x1xf32, #tpu.memory_space<vmem>>, vector<8x1xf32>,
      %cst_30 = arith.constant 0.000000e+00 : f32
      %39 = vector.broadcast %cst_30 : f32 to vector<8x1xf32>
      %c0_31 = arith.constant 0 : index
      %c0_32 = arith.constant 0 : index
      %40 = vector.load %arg8[%c0_31, %c0_32] : memref<8x1xf32, #tpu.memory_space<vmem>>, vector<8x1xf32>
      tpu.vector_store %arg8[%c0_31, %c0_32], %39 {strides = array<i32>} : memref<8x1xf32, #tpu.memory_space<vmem>>, vector<8x1xf32>,
      %cst_33 = arith.constant 0.000000e+00 : f32
      %41 = vector.broadcast %cst_33 : f32 to vector<8x128xf32>
      %c0_34 = arith.constant 0 : index
      %c0_35 = arith.constant 0 : index
      %42 = vector.load %arg9[%c0_34, %c0_35] : memref<8x128xf32, #tpu.memory_space<vmem>>, vector<8x128xf32>
      tpu.vector_store %arg9[%c0_34, %c0_35], %41 {strides = array<i32>} : memref<8x128xf32, #tpu.memory_space<vmem>>, vector<8x128xf32>,
    } else {
    }
    %c0 = arith.constant 0 : index
    %c0_1 = arith.constant 0 : index
    %c0_2 = arith.constant 0 : index
    %3 = vector.load %arg3[%c0, %c0_1, %c0_2] : memref<1x8x128xf32, #tpu.memory_space<vmem>>, vector<1x8x128xf32>
    %4 = vector.shape_cast %3 : vector<1x8x128xf32> to vector<8x128xf32>
    %cst = arith.constant 0.176776692 : f32
    %5 = vector.broadcast %cst : f32 to vector<8x128xf32>
    %6 = arith.mulf %4, %5 : vector<8x128xf32>
    %c0_3 = arith.constant 0 : index
    %c0_4 = arith.constant 0 : index
    %c0_5 = arith.constant 0 : index
    %7 = vector.load %arg4[%c0_3, %c0_4, %c0_5] : memref<1x8x128xf32, #tpu.memory_space<vmem>>, vector<1x8x128xf32>
    %8 = vector.shape_cast %7 : vector<1x8x128xf32> to vector<8x128xf32>
    %c0_6 = arith.constant 0 : index
    %c0_7 = arith.constant 0 : index
    %c0_8 = arith.constant 0 : index
    %9 = vector.load %arg5[%c0_6, %c0_7, %c0_8] : memref<1x8x128xf32, #tpu.memory_space<vmem>>, vector<1x8x128xf32>
    %10 = vector.shape_cast %9 : vector<1x8x128xf32> to vector<8x128xf32>
    %cst_9 = arith.constant dense<0.000000e+00> : vector<8x8xf32>
    %11 = tpu.matmul %6, %8, %cst_9 {dimension_numbers = #tpu.dot_dimension_numbers<[1], [1], [0], [0], [0, 0, 1, 0], [], []>} : vector<8x128xf32>, vector<8x128xf32>, vector<8x8xf32> -> vector<8x8xf32>
    %c0_10 = arith.constant 0 : index
    %c0_11 = arith.constant 0 : index
    %12 = vector.load %arg7[%c0_10, %c0_11] : memref<8x1xf32, #tpu.memory_space<vmem>>, vector<8x1xf32>
    %cst_12 = arith.constant dense<0xFF800000> : vector<8xf32>
    %13 = vector.multi_reduction <maximumf>, %11, %cst_12 [1] : vector<8x8xf32> to vector<8xf32>
    %14 = vector.shape_cast %13 : vector<8xf32> to vector<8x1xf32>
    %15 = arith.maximumf %12, %14 : vector<8x1xf32>
    %16 = arith.subf %12, %15 : vector<8x1xf32>
    %17 = math.exp %16 : vector<8x1xf32>
    %18 = vector.broadcast %15 : vector<8x1xf32> to vector<8x8xf32>
    %19 = arith.subf %11, %18 : vector<8x8xf32>
    %20 = math.exp %19 : vector<8x8xf32>
    %c0_13 = arith.constant 0 : index
    %c0_14 = arith.constant 0 : index
    %21 = vector.load %arg8[%c0_13, %c0_14] : memref<8x1xf32, #tpu.memory_space<vmem>>, vector<8x1xf32>
    %22 = arith.mulf %17, %21 : vector<8x1xf32>
    %cst_15 = arith.constant dense<0.000000e+00> : vector<8xf32>
    %23 = vector.multi_reduction <add>, %20, %cst_15 [1] : vector<8x8xf32> to vector<8xf32>
    %24 = vector.shape_cast %23 : vector<8xf32> to vector<8x1xf32>
    %25 = arith.addf %22, %24 : vector<8x1xf32>
    %c0_16 = arith.constant 0 : index
    %c0_17 = arith.constant 0 : index
    %26 = vector.load %arg8[%c0_16, %c0_17] : memref<8x1xf32, #tpu.memory_space<vmem>>, vector<8x1xf32>
    tpu.vector_store %arg8[%c0_16, %c0_17], %25 {strides = array<i32>} : memref<8x1xf32, #tpu.memory_space<vmem>>, vector<8x1xf32>,
    %c0_18 = arith.constant 0 : index
    %c0_19 = arith.constant 0 : index
    %27 = vector.load %arg9[%c0_18, %c0_19] : memref<8x128xf32, #tpu.memory_space<vmem>>, vector<8x128xf32>
    %28 = vector.broadcast %17 : vector<8x1xf32> to vector<8x128xf32>
    %29 = arith.mulf %28, %27 : vector<8x128xf32>
    %cst_20 = arith.constant dense<0.000000e+00> : vector<8x128xf32>
    %30 = tpu.matmul %20, %10, %cst_20 {dimension_numbers = #tpu.dot_dimension_numbers<[1], [0], [0], [1], [0, 0, 1, 1], [], []>} : vector<8x8xf32>, vector<8x128xf32>, vector<8x128xf32> -> vector<8x128xf32>
    %31 = arith.addf %29, %30 : vector<8x128xf32>
    %c0_21 = arith.constant 0 : index
    %c0_22 = arith.constant 0 : index
    %32 = vector.load %arg9[%c0_21, %c0_22] : memref<8x128xf32, #tpu.memory_space<vmem>>, vector<8x128xf32>
    tpu.vector_store %arg9[%c0_21, %c0_22], %31 {strides = array<i32>} : memref<8x128xf32, #tpu.memory_space<vmem>>, vector<8x128xf32>,
    %c0_23 = arith.constant 0 : index
    %c0_24 = arith.constant 0 : index
    %33 = vector.load %arg7[%c0_23, %c0_24] : memref<8x1xf32, #tpu.memory_space<vmem>>, vector<8x1xf32>
    tpu.vector_store %arg7[%c0_23, %c0_24], %15 {strides = array<i32>} : memref<8x1xf32, #tpu.memory_space<vmem>>, vector<8x1xf32>,
    %c0_i32_25 = arith.constant 0 : i32
    %34 = arith.cmpi eq, %arg2, %c0_i32_25 : i32
    %35 = arith.extui %34 : i1 to i32
    %c0_i32_26 = arith.constant 0 : i32
    %36 = arith.cmpi ne, %35, %c0_i32_26 : i32
    scf.if %36 {
      %c0_27 = arith.constant 0 : index
      %c0_28 = arith.constant 0 : index
      %37 = vector.load %arg8[%c0_27, %c0_28] : memref<8x1xf32, #tpu.memory_space<vmem>>, vector<8x1xf32>
      %38 = tpu.reciprocal %37 {approx = true} : vector<8x1xf32> -> vector<8x1xf32>
      %c0_29 = arith.constant 0 : index
      %c0_30 = arith.constant 0 : index
      %39 = vector.load %arg9[%c0_29, %c0_30] : memref<8x128xf32, #tpu.memory_space<vmem>>, vector<8x128xf32>
      %40 = vector.broadcast %38 : vector<8x1xf32> to vector<8x128xf32>
      %41 = arith.mulf %39, %40 : vector<8x128xf32>
      %c0_31 = arith.constant 0 : index
      %c0_32 = arith.constant 0 : index
      %c0_33 = arith.constant 0 : index
      %42 = vector.load %arg6[%c0_31, %c0_32, %c0_33] : memref<1x8x128xf32, #tpu.memory_space<vmem>>, vector<1x8x128xf32>
      %43 = vector.shape_cast %42 : vector<1x8x128xf32> to vector<8x128xf32>
      %44 = vector.shape_cast %41 : vector<8x128xf32> to vector<1x8x128xf32>
      tpu.vector_store %arg6[%c0_31, %c0_32, %c0_33], %44 {strides = array<i32>} : memref<1x8x128xf32, #tpu.memory_space<vmem>>, vector<1x8x128xf32>,
    } else {
    }
    return
  }
  func.func @transform_0(%arg0: i32, %arg1: i32, %arg2: i32) -> (i32, i32, i32) {
    %c0_i32 = arith.constant 0 : i32
    %c0_i32_0 = arith.constant 0 : i32
    return %arg0, %arg1, %c0_i32 : i32, i32, i32
  }
  func.func @transform_1(%arg0: i32, %arg1: i32, %arg2: i32) -> (i32, i32, i32) {
    %c0_i32 = arith.constant 0 : i32
    %c0_i32_0 = arith.constant 0 : i32
    return %arg0, %arg2, %c0_i32 : i32, i32, i32
  }
  func.func @transform_2(%arg0: i32, %arg1: i32, %arg2: i32) -> (i32, i32, i32) {
    %c0_i32 = arith.constant 0 : i32
    %c0_i32_0 = arith.constant 0 : i32
    return %arg0, %arg2, %c0_i32 : i32, i32, i32
  }
  func.func @transform_3(%arg0: i32, %arg1: i32, %arg2: i32) -> (i32, i32, i32) {
    %c0_i32 = arith.constant 0 : i32
    %c0_i32_0 = arith.constant 0 : i32
    return %arg0, %arg1, %c0_i32 : i32, i32, i32
  }
}

</mosaic_0001>

<bundles_post_ra>
// kernel: tpu_custom_call.1
= control target key start
LH: loop header
LB: loop body
LE: loop exit
PB: predicated region body
PF: predicated region fallthrough
CT: control target
= control target key end

     0   :  { %s1011_s0 = inlined_call_operand.hbm [shape: f32[2,8,128], index: 0, kind: input, shape index: {}]   ;;  %s1012_s1 = inlined_call_operand.hbm [shape: f32[2,8,128], index: 1, kind: input, shape index: {}]   ;;  %s1013_s2 = inlined_call_operand.hbm [shape: f32[2,8,128], index: 2, kind: input, shape index: {}]   ;;  %s1014_s3 = inlined_call_operand.hbm [shape: f32[2,8,128], index: 3, kind: output, shape index: {}]  }
   0x1   :  { %1017 = sst [smem:[#allocation18_spill]] %s1012_s1 }
   0x2   :  { %8 = vsyncpa [#allocation6], 0 }
   0x3   :  { %10 = vsyncpa [#allocation6 + $0x1], 0 }
   0x4   :  { %11 = vsyncpa [#allocation9], 0 }
   0x5   :  { %13 = vsyncpa [#allocation9 + $0x1], 0 }
   0x6   :  { %14 = vsyncpa [#allocation7], 0 }
   0x7   :  { %16 = vsyncpa [#allocation7 + $0x1], 0  ;;  %s846_s12 = smov 0   ;;  %s848_s13 = smov 0  }
   0x8   :  { %s850_s14 = smov 0   ;;  %s852_s15 = smov 0  }
   0x9   :  { %s854_s16 = smov 0   ;;  %s856_s17 = smov 0  }
   0xa LB: > { %1018 = sst [smem:[#allocation15_spill]] %s817_s16  ;;  %s877_s18 = sadd.s32 4294967295, %s821_s17   ;;  %s821_s17 = sphi %s856_s17, %s22_s17   ;;  %s817_s16 = sphi %s854_s16, %s1030_s16   ;;  %s813_s15 = sphi %s852_s15, %s1029_s15   ;;  %s809_s14 = sphi %s850_s14, %s1033_s14   ;;  %s805_s13 = sphi %s848_s13, %s1032_s13   ;;  %s801_s12 = sphi %s846_s12, %s1031_s12  }
   0xb   : > { %s542_s19 = sadd.s32 4294967294, %s821_s17   ;;  %s41_s20 = sadd.s32 1, %s817_s16 }
   0xc   : > { %s50_s21 = sadd.s32 1, %s809_s14  ;;  %p43_p0 = scmp.ge.s32.totalorder %s41_s20, 2 }
   0xd   : > { %p57_p1 = scmp.ne.s32.totalorder %s809_s14, %s805_s13  ;;  %p58_p2 = scmp.eq.s32.totalorder %s821_s17, 0 }
   0xe   : > { %p63_p3 = scmp.ne.s32.totalorder %s805_s13, %s801_s12  ;;  %s1035_s20 = smov (%p43_p0, %s41_s20), 0 }
   0xf   : > { %1019 = sst [smem:[#allocation16_spill]] %s1035_s20  ;;  %p889_p4 = por %p58_p2, %p57_p1 }
  0x10   : > { %p64_p5 = scmp.eq.s32.totalorder %s877_s18, 0  ;;  %s45_s23 = ssub.s32 %s817_s16, %s1035_s20 }
  0x11   : > { %p145_p6 = scmp.eq.s32.totalorder %s877_s18, 1  ;;  %p48_p7 = scmp.eq.s32.totalorder %s45_s23, 0 }
  0x12   : > { %p897_p8 = por %p64_p5, %p63_p3  ;;  %p151_p10 = scmp.eq.s32.totalorder %s542_s19, 1 }
  0x13   : > { %p901_p9 = por %p145_p6, %p57_p1  ;;  %p544_p12 = scmp.ge.s32.totalorder %s821_s17, 2 }
  0x14   : > { %s906_s26 = scalar_select %p48_p7, %s809_s14, %s50_s21  }
  0x15   : > { %p908_p11 = por %p151_p10, %p63_p3  ;;  %p583_p13 = scmp.lt.s32.totalorder %s821_s17, 2 }
  0x16   : > { %1023 = sst [smem:[#allocation17_spill]] %s906_s26  ;;  %s171_s28 = sand.u32 1, %s809_s14  }
  0x17   : > { %s545_s29 = sshll.u32 %s171_s28, 3  ;;  %s546_s30 = sshll.u32 %s817_s16, 3 }
  0x18   : > { %p918_p0 = pnand %p583_p13, %p889_p4  ;;  %s191_s5 = sand.u32 1, %s821_s17  }
  0x19   : > { %s1026_s1 = sld [smem:[#allocation18_spill]]  ;;  %s195_s10 = scalar_lea.vmem [#allocation8], %s545_s29 }
  0x1a   : > { %s204_s11 = sshll.u32 %s195_s10, 4  ;;  %s192_s19 = scalar_lea.sflag [#allocation9], %s191_s5  ;;  %s205_s11 = int_to_ptr.vmem [resolvable:$true] %s204_s11 }
  0x1b   : > { %p551_p1 = scmp.ge.s32.totalorder %s821_s17, 1  ;;  %p229_p2 = scmp.lt.s32.totalorder %s821_s17, 3 }
  0x1c   : > { %s180_s6 = scalar_lea.hbm %s1011_s0, %s546_s30  ;;  %s172_s10 = scalar_lea.sflag [#allocation6], %s171_s28 }
  0x1d   : > { %p930_p3 = pnand %p551_p1, %p229_p2  ;;  %s182_s7 = sshll.u32 %s180_s6, 4  ;;  %s183_s7 = int_to_ptr.hbm [resolvable:$true] %s182_s7 }
  0x1e   : > { %s215_s16 = scalar_lea.vmem [#allocation10], %s545_s29  ;;  %s947_s22 = sand.u32 (!%p930_p3), 1, %s805_s13  }
  0x1f   : > { %s200_s8 = scalar_lea.hbm %s1026_s1, %s546_s30  ;;  %s224_s26 = sshll.u32 %s215_s16, 4  ;;  %s225_s26 = int_to_ptr.vmem [resolvable:$true] %s224_s26 }
  0x20   : > { %s202_s9 = sshll.u32 %s200_s8, 4  ;;  %s175_s8 = scalar_lea.vmem [#allocation5], %s545_s29  ;;  %s203_s9 = int_to_ptr.hbm [resolvable:$true] %s202_s9 }
  0x21   : > { %575 = dma.hbm_to_vmem [thread:$0]  (!%p918_p0), %s203_s9, 128, %s205_s11, %s192_s19  }
  0x22   : > { %s184_s1 = sshll.u32 %s175_s8, 4  ;;  %s220_s11 = scalar_lea.hbm %s1013_s2, %s546_s30  ;;  %s185_s1 = int_to_ptr.vmem [resolvable:$true] %s184_s1 }
  0x23   : > { %572 = dma.hbm_to_vmem [thread:$0]  (!%p918_p0), %s183_s7, 128, %s185_s1, %s172_s10  }
  0x24   : > { %s222_s20 = sshll.u32 %s220_s11, 4  ;;  %233 = sbr.rel (%p930_p3) target bundleno = 650 (0x28a), region = 32  ;;  %s223_s20 = int_to_ptr.hbm [resolvable:$true] %s222_s20 }
  0x25   : > { %578 = dma.hbm_to_vmem [thread:$0]  (!%p918_p0), %s223_s20, 128, %s225_s26, %s192_s19  }
  0x26   : > { %s950_s1 = sshll.u32 (!%p930_p3), %s947_s22, 3  ;;  %s236_s28 = scalar_lea.sflag (!%p930_p3), [#allocation6], %s947_s22 }
  0x27   : > { %s239_s30 = scalar_lea.vmem (!%p930_p3), [#allocation5], %s950_s1 }
  0x29   : > { %788 = dma.done.wait (%p897_p8), %s236_s28, 128  }
  0x2a   : > { %790 = vsyncadd (%p897_p8), %s236_s28, 4294967168  ;;  %s245_s16 = sand.u32 1, %s877_s18   ;;  %s249_s26 = scalar_lea.vmem [#allocation8], %s950_s1 }
  0x2b   : > { %s246_s20 = scalar_lea.sflag [#allocation9], %s245_s16 }
  0x2c   : > { %792 = dma.done.wait (%p897_p8), %s246_s20, 256  }
  0x2d   : > { %794 = vsyncadd (%p897_p8), %s246_s20, 4294967040  ;;  %v303_v0 = vld [vmem:[%s249_s26] sm:$0xff]  ;;  %v301_v1 = vld [vmem:[%s239_s30] sm:$0xff]  ;;  %vm297_vm0 = vcmask 7168   ;;  %v823_v3 = vmov -inf   ;;  %vm326_vm1 = vcmask 64512  }
  0x2e   : > { %320 = vmatpush.xpose.msra.mxu0 %v303_v0  ;;  %v302_v2 = vmul.f32 0.17677669, %v301_v1  ;;  %298 = vst.msk [vmem:[#allocation2] sm:$0xff] %vm297_vm0, %v823_v3  ;;  %v824_v6 = vmov 0   ;;  %v825_v7 = vmov 0.0   ;;  %s259_s18 = scalar_lea.vmem [#allocation10], %s950_s1 }
  0x2f   : > { %636 = vset.pattern.permute.xlu0 %v824_v6  ;;  %637 = vset.pattern.permute.xlu1 %v824_v6  ;;  %299 = vst.msk [vmem:[#allocation3] sm:$0xff] %vm297_vm0, %v825_v7  ;;  %v304_v12 = vld [vmem:[%s259_s18] sm:$0xff]  ;;  %s558_s24 = sshll.u32 %s813_s15, 3  ;;  %s292_s21 = scalar_lea.vmem [#allocation11], %s950_s1 }
  0x30   : > { %638 = vset.pattern.permute.xlu2 %v824_v6  ;;  %375 = vmatpush.msra.mxu1 %v304_v12  ;;  %s408_s19 = scalar_lea.hbm %s1014_s3, %s558_s24  ;;  %s410_s23 = sshll.u32 %s292_s21, 4  ;;  %s411_s23 = int_to_ptr.vmem [resolvable:$true] %s410_s23 }
  0x31   : > { %321 = vmatmul.f32.vlgmr.msra.gmra.mxu0 %v302_v2  ;;  %s412_s6 = sshll.u32 %s408_s19, 4  ;;  %s397_s7 = scalar_lea.sflag [#allocation7], %s947_s22  ;;  %s413_s6 = int_to_ptr.hbm [resolvable:$true] %s412_s6 }
  0x32   : > { %s749_s8 = sshra.s32 %s413_s6, 4  ;;  %s755_s9 = scalar_lea.hbm %s1014_s3, 16  ;;  %s750_s8 = int_to_ptr.hbm [resolvable:$true] %s749_s8 }
  0x33   : > { %s751_s15 = scalar_lea.hbm %s750_s8, 8  ;;  %p756_p7 = scmp.lt.s32.totalorder %s750_s8, %s1014_s3 }
  0x34   : > { %p752_p4 = scmp.ne.s32.totalorder %s750_s8, %s751_s15  ;;  %p757_p8 = scmp.lt.s32.totalorder %s755_s9, %s751_s15 }
  0x35   : > { %v325_v8 = vld [vmem:[#allocation2] sm:$0xff] }
  0x36   : > { %v342_v20 = vld [vmem:[#allocation3] sm:$0xff]  ;;  %p753_p5 = pnand %p752_p4, %p901_p9  ;;  %p758_p10 = por %p757_p8, %p756_p7 }
  0x38   : > { %p754_p6 = pneg %p753_p5 }
  0x3a   : > { %p759_p13 = pnand %p758_p10, %p754_p6 }
  0xae   : > { %v322_v4 = vpop.f32.mrf.mxu0 }
  0xaf   : > { %v327_v5 = vsel %vm326_vm1, %v322_v4, -inf }
  0xb0   : > { %328 = vmax.xlane.f32.xlu0 %v327_v5 }
 0x123   : > { %v329_v9 = vpop.xlane.xlu0 %328 }
 0x124   : > { %v330_v10 = vmax.f32 %v325_v8, %v329_v9 }
 0x126   : > { %v331_v11 = vsub.f32 %v325_v8, %v330_v10  ;;  %382 = vst.msk [vmem:[#allocation2] sm:$0xff] %vm297_vm0, %v330_v10  ;;  %336 = vperm.xlu0 %636, %v330_v10  }
 0x128   : > { %v332_v18 = vmul.f32 1.442695, %v331_v11 }
 0x198   : > { %v337_v13 = vpop.permute.xlu0 %336 }
 0x199   : > { %v339_v14 = vsub.f32 %v322_v4, %v337_v13 }
 0x19b   : > { %v340_v15 = vmul.f32 1.442695, %v339_v14 }
 0x19d   : > { %639 = vpow2.f32 %v340_v15 }
 0x19e   : > { %641 = vpow2.f32 %v332_v18 }
 0x1a3   : > { %v640_v16 = vpop.eup %639 }
 0x1a4   : > { %556 = vmatmul.msk.f32.vlgmr.msra.gmra.mxu1 %vm326_vm1, %v640_v16  ;;  %v344_v17 = vsel %vm326_vm1, %v640_v16, 0.0  ;;  %v642_v19 = vpop.eup %641 }
 0x1a5   : > { %345 = vadd.xlane.f32.xlu1 %v344_v17  ;;  %v343_v21 = vmul.f32 %v642_v19, %v342_v20 }
 0x1be   : > { %353 = vperm.xlu1 %637, %v642_v19  }
 0x218   : > { %v346_v22 = vpop.xlane.xlu1 %345 }
 0x219   : > { %v347_v23 = vadd.f32 %v346_v22, %v343_v21 }
 0x21b   : > { %349 = vst.msk [vmem:[#allocation3] sm:$0xff] %vm297_vm0, %v347_v23 }
 0x221   : > { %v377_v28 = vpop.f32.mrf.mxu1 }
 0x222   : > { %v386_v24 = vld [vmem:[#allocation3] sm:$0xff] }
 0x223   : > { %643 = vrcp.f32 %v386_v24 }
 0x229   : > { %v644_v25 = vpop.eup %643 }
 0x22a   : > { %391 = vperm.xlu2 %638, %v644_v25  }
 0x230   : > { %v354_v26 = vpop.permute.xlu1 %353 }
 0x231   : > { %v356_v27 = vmul.f32 0.0, %v354_v26 }
 0x233   : > { %v380_v29 = vadd.f32 %v377_v28, %v356_v27 }
 0x284   : > { %v392_v30 = vpop.permute.xlu2 %391 }
 0x285   : > { %v394_v31 = vmul.f32 %v392_v30, %v380_v29 }
 0x287   : > { %395 = vst [vmem:[%s292_s21] sm:$0xff] %v394_v31 }
 0x288   : > { %762 = shalt.err (!%p759_p13)
}
 0x289   : > { %567 = dma.vmem_to_hbm [thread:$0]  (%p901_p9), %s411_s23, 128, %s413_s6, %s397_s7  }
 0x28a PF: > { %s424_s22 = sand.u32 1, %s801_s12   ;;  %p580_p0 = pnand %p544_p12, %p908_p11 }
 0x28b   : > { %s425_s28 = scalar_lea.sflag [#allocation7], %s424_s22 }
 0x28c   : > { %p581_p1 = pneg %p580_p0 }
 0x28e   : > { %796 = dma.done.wait (%p581_p1), %s425_s28, 128  }
 0x28f   : > { %798 = vsyncadd (%p581_p1), %s425_s28, 4294967168  ;;  %s22_s17 = sadd.s32 1, %s821_s17   ;;  %s1028_s30 = sld [smem:[#allocation17_spill]] }
 0x290   : > { %p19_p2 = scmp.ge.s32.totalorder %s22_s17, 4   ;;  %s1029_s15 = sld [smem:[#allocation15_spill]] }
 0x291   : > { %s1030_s16 = sld [smem:[#allocation16_spill]]  ;;  %s1031_s12 = smov %s805_s13 }
 0x292   : > { %s1032_s13 = smov %s809_s14  ;;  %21 = sbr.rel (!%p19_p2) target bundleno = 10 (0xa), region = 109 }
 0x295   : > { %s1033_s14 = smov %s1028_s30 }
 0x297   :  { %431 = vsyncpa [#allocation6], 1 }
 0x298   :  { %433 = vsyncpa [#allocation6 + $0x1], 1 }
 0x299   :  { %434 = vsyncpa [#allocation9], 1 }
 0x29a   :  { %436 = vsyncpa [#allocation9 + $0x1], 1 }
 0x29b   :  { %437 = vsyncpa [#allocation7], 1 }
 0x29c   :  { %439 = vsyncpa [#allocation7 + $0x1], 1 }

</bundles_post_ra>
